<compile_context>
chip_gen: v6e
topology: v6e:2x2x1
jax: 0.10.0
libtpu: 0.0.40
codegen_flags: <defaults>
</compile_context>

<pallas_src>
import math

import jax
import jax.numpy as jnp
from jax.experimental import pallas as pl
from jax.experimental.pallas import tpu as pltpu

EPS = 1e-5

# below this Cin the im2col single-dot path is used; at/above it, KH*KW accumulated
# tap dots read directly from the padded slab (each dot already fills MXU K).
DIRECT_TAP_DOT_MIN_CIN = 128


# ------------------------------ fused kernel -------------------------------- #

def _make_fused_kernel(H, W, Cin, KH, KW, stride, pad, Cout, OH, OW,
                       res_mode, res_cin, compute_dtype, use_im2col):
    """Fused eval-BN + ReLU + conv (+ optional residual epilogue) kernel factory.

    Ref order: x, scale, bias, w2d, b, [residual inputs...], out, [scratch...]
    Output block is (1, OH*OW, Cout); the wrapper reshapes to NHWC.
    """
    M = OH * OW
    Hp, Wp = H + 2 * pad, W + 2 * pad
    simple = (KH == 1 and KW == 1 and pad == 0)   # pure 1x1 conv, stride already 1

    def kernel(*refs):
        x_ref, scale_ref, bias_ref, w_ref, b_ref = refs[:5]
        pos = 5
        xin_ref = wr_ref = br_ref = None
        if res_mode == "conv":
            xin_ref, wr_ref, br_ref = refs[pos:pos + 3]
            pos += 3
        elif res_mode == "identity":
            xin_ref = refs[pos]
            pos += 1
        o_ref = refs[pos]
        pos += 1
        scratch = refs[pos:]

        scale = scale_ref[...]            # (1, Cin)  folded BN scale
        bias = bias_ref[...]              # (1, Cin)  folded BN bias

        # ---- main path: BN + ReLU + conv ------------------------------------- #
        if simple:
            y = jnp.maximum(x_ref[0] * scale + bias, 0.0)             # (H, W, Cin)
            lhs = y.reshape(M, Cin).astype(compute_dtype)
            acc = jnp.dot(lhs, w_ref[...], preferred_element_type=jnp.float32)
        else:
            xpad_ref = scratch[0]
            # BN + ReLU in f32, stored to the padded slab already in compute_dtype
            y = jnp.maximum(x_ref[0] * scale + bias, 0.0).astype(compute_dtype)
            if pad > 0:
                # zero ONLY the four halo strips (not the whole slab): cheap, and
                # correct regardless of how the batch axis is sharded across cores.
                xpad_ref[0:pad, :, :] = jnp.zeros((pad, Wp, Cin), compute_dtype)
                xpad_ref[pad + H:Hp, :, :] = jnp.zeros((pad, Wp, Cin), compute_dtype)
                xpad_ref[pad:pad + H, 0:pad, :] = jnp.zeros((H, pad, Cin), compute_dtype)
                xpad_ref[pad:pad + H, pad + W:Wp, :] = jnp.zeros((H, pad, Cin),
                                                                 compute_dtype)
                xpad_ref[pad:pad + H, pad:pad + W, :] = y
            else:
                xpad_ref[...] = y

            if use_im2col:
                # im2col: gather taps into (M, KH*KW*Cin), one MXU dot.
                cols_ref = scratch[1]
                for kh in range(KH):
                    for kw in range(KW):
                        if stride == 1:
                            patch = xpad_ref[pl.ds(kh, OH), pl.ds(kw, OW), :]
                        else:
                            patch = xpad_ref[pl.ds(kh, OH, stride),
                                             pl.ds(kw, OW, stride), :]
                        tap = kh * KW + kw
                        cols_ref[:, tap * Cin:(tap + 1) * Cin] = patch.reshape(M, Cin)
                acc = jnp.dot(cols_ref[...], w_ref[...],
                              preferred_element_type=jnp.float32)
            else:
                # large-Cin path: KH*KW accumulated dots straight from the slab
                # (no cols buffer, no 9x copy traffic).
                acc = jnp.zeros((M, Cout), jnp.float32)
                for kh in range(KH):
                    for kw in range(KW):
                        if stride == 1:
                            patch = xpad_ref[pl.ds(kh, OH), pl.ds(kw, OW), :]
                        else:
                            patch = xpad_ref[pl.ds(kh, OH, stride),
                                             pl.ds(kw, OW, stride), :]
                        tap = kh * KW + kw
                        acc = acc + jnp.dot(
                            patch.reshape(M, Cin),
                            w_ref[tap * Cin:(tap + 1) * Cin, :],
                            preferred_element_type=jnp.float32)

        acc = acc + b_ref[...]                                        # (M, Cout)

        # ---- residual epilogue (last layer only) ----------------------------- #
        if res_mode == "conv":
            # residual input is pre-subsampled in the wrapper -> plain 1x1 dot
            r = jnp.dot(xin_ref[0].reshape(M, res_cin).astype(compute_dtype),
                        wr_ref[...], preferred_element_type=jnp.float32)
            acc = acc + r + br_ref[...]
        elif res_mode == "identity":
            acc = acc + xin_ref[0].reshape(M, Cout)

        o_ref[0] = acc.astype(o_ref.dtype)                            # (M, Cout)

    return kernel


# ------------------------------ JAX wrapper ---------------------------------- #

def fused_bn_relu_conv(x, gamma, beta, mean, var, w_hwio, b, *, stride, padding,
                       residual=None, compute_dtype=jnp.float32):
    """y = conv(relu(bn_eval(x))) [+ residual epilogue], one pallas_call, NHWC."""
    N, H, W, Cin = x.shape
    KH, KW, _, Cout = w_hwio.shape
    OH = (H + 2 * padding - KH) // stride + 1
    OW = (W + 2 * padding - KW) // stride + 1
    simple = (KH == 1 and KW == 1 and padding == 0)

    # strided 1x1 conv: pre-subsample with a cheap XLA strided slice (BN/ReLU commute
    # with subsampling) -> ~stride^2 less HBM read, no strided ref reads in-kernel.
    if simple and stride > 1:
        x = x[:, ::stride, ::stride, :]
        N, H, W, Cin = x.shape
        assert (H, W) == (OH, OW)
        stride = 1

    Hp, Wp = H + 2 * padding, W + 2 * padding
    M = OH * OW

    # fold eval-mode BN into per-channel scale / bias (tiny host-side vectors)
    inv_std = 1.0 / jnp.sqrt(var + EPS)
    scale = (gamma * inv_std).astype(jnp.float32).reshape(1, Cin)
    bias = (beta - mean * gamma * inv_std).astype(jnp.float32).reshape(1, Cin)
    w2d = w_hwio.reshape(KH * KW * Cin, Cout).astype(compute_dtype)   # im2col weights

    inputs = [x, scale, bias, w2d, b.reshape(1, Cout).astype(jnp.float32)]
    in_specs = [
        pl.BlockSpec((1, H, W, Cin), lambda i: (i, 0, 0, 0)),
        pl.BlockSpec((1, Cin), lambda i: (0, 0)),
        pl.BlockSpec((1, Cin), lambda i: (0, 0)),
        pl.BlockSpec((KH * KW * Cin, Cout), lambda i: (0, 0)),
        pl.BlockSpec((1, Cout), lambda i: (0, 0)),
    ]

    res_mode, res_cin = None, None
    if residual is not None:
        res_mode = residual["mode"]
        xin = residual["x"]
        if res_mode == "conv":
            rs = residual["stride"]
            if rs > 1:
                xin = xin[:, ::rs, ::rs, :]          # pre-subsample residual input
            _, H0, W0, C0 = xin.shape
            assert (H0, W0) == (OH, OW)
            res_cin = C0
            inputs += [xin,
                       residual["w"].reshape(C0, Cout).astype(compute_dtype),
                       residual["b"].reshape(1, Cout).astype(jnp.float32)]
            in_specs += [
                pl.BlockSpec((1, OH, OW, C0), lambda i: (i, 0, 0, 0)),
                pl.BlockSpec((C0, Cout), lambda i: (0, 0)),
                pl.BlockSpec((1, Cout), lambda i: (0, 0)),
            ]
        else:  # identity residual: shapes must already match the output
            _, H0, W0, C0 = xin.shape
            assert (H0, W0, C0) == (OH, OW, Cout)
            inputs += [xin]
            in_specs += [pl.BlockSpec((1, OH, OW, Cout), lambda i: (i, 0, 0, 0))]

    use_im2col = Cin < DIRECT_TAP_DOT_MIN_CIN
    scratch_shapes = []
    if not simple:
        scratch_shapes = [pltpu.VMEM((Hp, Wp, Cin), compute_dtype)]   # padded slab
        if use_im2col:
            scratch_shapes.append(
                pltpu.VMEM((M, KH * KW * Cin), compute_dtype))        # im2col buffer

    # advisory cost estimate so XLA schedules the surrounding reshapes/slices sensibly
    flops = 2 * N * M * (KH * KW * Cin) * Cout + 3 * N * H * W * Cin
    if res_mode == "conv":
        flops += 2 * N * M * res_cin * Cout
    bytes_accessed = sum(int(a.size) * a.dtype.itemsize for a in inputs) \
        + N * M * Cout * x.dtype.itemsize
    cost = pl.CostEstimate(flops=flops, transcendentals=0,
                           bytes_accessed=bytes_accessed)

    kernel = _make_fused_kernel(H, W, Cin, KH, KW, stride, padding, Cout, OH, OW,
                                res_mode, res_cin, compute_dtype, use_im2col)
    out = pl.pallas_call(
        kernel,
        out_shape=jax.ShapeDtypeStruct((N, M, Cout), x.dtype),
        grid=(N,),
        in_specs=in_specs,
        out_specs=pl.BlockSpec((1, M, Cout), lambda i: (i, 0, 0)),
        scratch_shapes=scratch_shapes,
        compiler_params=pltpu.CompilerParams(
            dimension_semantics=("parallel",),        # batch axis -> both TCs on v7x
            vmem_limit_bytes=32 * 1024 * 1024),       # explicit (v5e default is 16 MiB)
        cost_estimate=cost,
    )(*inputs)
    # (N, OH*OW, Cout) -> NHWC; free row-major reshape outside the kernel
    return out.reshape(N, OH, OW, Cout)


def residual_block_forward(x_nchw, params, compute_dtype=jnp.float32):
    # TODO(synk): at network scope keep activations NHWC end-to-end so these
    #             transposes happen once per network, not once per block.
    x = jnp.transpose(x_nchw, (0, 2, 3, 1))          # NCHW -> NHWC (C on lanes)
    layers = params["layers"]
    y = x
    for idx, lp in enumerate(layers):
        residual = None
        if idx == len(layers) - 1:                    # fuse residual into last conv
            if params["residual"] is not None:
                rp = params["residual"]
                residual = dict(mode="conv", x=x, w=rp["w"], b=rp["b"],
                                stride=rp["stride"])
            else:
                residual = dict(mode="identity", x=x)
        y = fused_bn_relu_conv(y, lp["gamma"], lp["beta"], lp["mean"], lp["var"],
                               lp["w"], lp["b"], stride=lp["stride"],
                               padding=lp["padding"], residual=residual,
                               compute_dtype=compute_dtype)
    return jnp.transpose(y, (0, 3, 1, 2))            # NHWC -> NCHW


# --------------------- deterministic parameter init ------------------------ #

def init_params(key, in_c, out_cs, kernels, strides, paddings):
    chans = [in_c] + list(out_cs)
    layers = []
    for n in range(3):
        cin, cout, k = chans[n], chans[n + 1], kernels[n]
        key, k1, k2, k3, k4, k5, k6 = jax.random.split(key, 7)
        layers.append(dict(
            gamma=jax.random.uniform(k1, (cin,), minval=0.5, maxval=1.5),
            beta=0.1 * jax.random.normal(k2, (cin,)),
            mean=0.1 * jax.random.normal(k3, (cin,)),
            var=jax.random.uniform(k4, (cin,), minval=0.5, maxval=1.5),
            w=0.1 * jax.random.normal(k5, (k, k, cin, cout)),   # HWIO
            b=0.1 * jax.random.normal(k6, (cout,)),
            stride=strides[n],
            padding=paddings[n],
        ))
    out_c = out_cs[-1]
    if in_c != out_c:
        key, k1, k2 = jax.random.split(key, 3)
        residual = dict(
            w=0.1 * jax.random.normal(k1, (1, 1, in_c, out_c)),
            b=0.1 * jax.random.normal(k2, (out_c,)),
            stride=int(math.prod(strides)),
        )
    else:
        residual = None
    return dict(layers=layers, residual=residual)


# ----------------------------- pure-JAX reference -------------------------- #

def reference_forward(x_nchw, params):
    def bn_relu_ref(x, lp):
        scale = lp["gamma"] / jnp.sqrt(lp["var"] + EPS)
        bias = lp["beta"] - lp["mean"] * scale
        y = x * scale[None, :, None, None] + bias[None, :, None, None]
        return jnp.maximum(y, 0.0)

    def conv_ref(x, w_hwio, b, stride, padding):
        w_oihw = jnp.transpose(w_hwio, (3, 2, 0, 1))
        y = jax.lax.conv_general_dilated(
            x, w_oihw, (stride, stride),
            [(padding, padding), (padding, padding)],
            dimension_numbers=("NCHW", "OIHW", "NCHW"),
            precision=jax.lax.Precision.HIGHEST)
        return y + b[None, :, None, None]

    y = x_nchw
    for lp in params["layers"]:
        y = conv_ref(bn_relu_ref(y, lp), lp["w"], lp["b"], lp["stride"], lp["padding"])
    if params["residual"] is not None:
        rp = params["residual"]
        r = conv_ref(x_nchw, rp["w"], rp["b"], rp["stride"], 0)
    else:
        r = x_nchw
    return y + r


# ----------------------------------- main ---------------------------------- #

if __name__ == "__main__":
    key = jax.random.PRNGKey(0)
    in_c = 4
    out_cs = [4, 4, 8]
    kernels = [1, 3, 1]
    strides = [1, 2, 1]
    paddings = [0, 1, 0]

    key, pkey, xkey = jax.random.split(key, 3)
    params = init_params(pkey, in_c, out_cs, kernels, strides, paddings)
    x = jax.random.normal(xkey, (2, in_c, 16, 16), dtype=jnp.float32)

    # compute_dtype=jnp.bfloat16 is recommended on v6e/v7x at real channel counts
    # (loosen the tolerance accordingly); f32 here keeps the correctness check tight.
    out = residual_block_forward(x, params, compute_dtype=jnp.float32)
    out = jax.block_until_ready(out)

    ref = reference_forward(x, params)
    assert out.shape == ref.shape == (2, out_cs[-1], 8, 8), (out.shape, ref.shape)
    if not bool(jnp.allclose(out, ref, atol=2e-3, rtol=2e-3)):
        raise RuntimeError("Pallas ResidualBlock does not match reference")
    print("KERNEL_OK")
</pallas_src>

<mosaic_0001>
module attributes {stable_mosaic.version = 11 : i64} {
  func.func @kernel(%arg0: i32, %arg1: memref<1x16x16x4xf32, #tpu.memory_space<vmem>>, %arg2: memref<1x4xf32, #tpu.memory_space<vmem>>, %arg3: memref<1x4xf32, #tpu.memory_space<vmem>>, %arg4: memref<4x4xf32, #tpu.memory_space<vmem>>, %arg5: memref<1x4xf32, #tpu.memory_space<vmem>>, %arg6: memref<1x256x4xf32, #tpu.memory_space<vmem>>) attributes {dimension_semantics = [#tpu.dimension_semantics<parallel>], iteration_bounds = array<i64: 2>, scalar_prefetch = 0 : i64, scratch_operands = 0 : i64, tpu.core_type = #tpu.core_type<tc>, window_params = [{transform_indices = @transform_0, window_bounds = array<i64: 1, 16, 16, 4>}, {pipeline_mode = #tpu.pipeline_mode<synchronous>, transform_indices = @transform_1, window_bounds = array<i64: 1, 4>}, {pipeline_mode = #tpu.pipeline_mode<synchronous>, transform_indices = @transform_2, window_bounds = array<i64: 1, 4>}, {pipeline_mode = #tpu.pipeline_mode<synchronous>, transform_indices = @transform_3, window_bounds = array<i64: 4, 4>}, {pipeline_mode = #tpu.pipeline_mode<synchronous>, transform_indices = @transform_4, window_bounds = array<i64: 1, 4>}, {transform_indices = @transform_5, window_bounds = array<i64: 1, 256, 4>}]} {
    %c0 = arith.constant 0 : index
    %c0_0 = arith.constant 0 : index
    %0 = vector.load %arg2[%c0, %c0_0] : memref<1x4xf32, #tpu.memory_space<vmem>>, vector<1x4xf32>
    %c0_1 = arith.constant 0 : index
    %c0_2 = arith.constant 0 : index
    %1 = vector.load %arg3[%c0_1, %c0_2] : memref<1x4xf32, #tpu.memory_space<vmem>>, vector<1x4xf32>
    %c0_3 = arith.constant 0 : index
    %c0_4 = arith.constant 0 : index
    %c0_5 = arith.constant 0 : index
    %c0_6 = arith.constant 0 : index
    %2 = vector.load %arg1[%c0_3, %c0_4, %c0_5, %c0_6] : memref<1x16x16x4xf32, #tpu.memory_space<vmem>>, vector<1x16x16x4xf32>
    %3 = vector.shape_cast %2 : vector<1x16x16x4xf32> to vector<16x16x4xf32>
    %4 = vector.shape_cast %0 : vector<1x4xf32> to vector<1x1x4xf32>
    %5 = vector.broadcast %4 : vector<1x1x4xf32> to vector<16x16x4xf32>
    %6 = arith.mulf %3, %5 : vector<16x16x4xf32>
    %7 = vector.shape_cast %1 : vector<1x4xf32> to vector<1x1x4xf32>
    %8 = vector.broadcast %7 : vector<1x1x4xf32> to vector<16x16x4xf32>
    %9 = arith.addf %6, %8 : vector<16x16x4xf32>
    %cst = arith.constant 0.000000e+00 : f32
    %10 = vector.broadcast %cst : f32 to vector<16x16x4xf32>
    %11 = arith.maximumf %9, %10 : vector<16x16x4xf32>
    %12 = vector.shape_cast %11 : vector<16x16x4xf32> to vector<256x4xf32>
    %c0_7 = arith.constant 0 : index
    %c0_8 = arith.constant 0 : index
    %13 = vector.load %arg4[%c0_7, %c0_8] : memref<4x4xf32, #tpu.memory_space<vmem>>, vector<4x4xf32>
    %cst_9 = arith.constant dense<0.000000e+00> : vector<256x4xf32>
    %14 = tpu.matmul %12, %13, %cst_9 {dimension_numbers = #tpu.dot_dimension_numbers<[1], [0], [0], [1], [0, 0, 1, 1], [], []>} : vector<256x4xf32>, vector<4x4xf32>, vector<256x4xf32> -> vector<256x4xf32>
    %c0_10 = arith.constant 0 : index
    %c0_11 = arith.constant 0 : index
    %15 = vector.load %arg5[%c0_10, %c0_11] : memref<1x4xf32, #tpu.memory_space<vmem>>, vector<1x4xf32>
    %16 = vector.broadcast %15 : vector<1x4xf32> to vector<256x4xf32>
    %17 = arith.addf %14, %16 : vector<256x4xf32>
    %c0_12 = arith.constant 0 : index
    %c0_13 = arith.constant 0 : index
    %c0_14 = arith.constant 0 : index
    %18 = vector.load %arg6[%c0_12, %c0_13, %c0_14] : memref<1x256x4xf32, #tpu.memory_space<vmem>>, vector<1x256x4xf32>
    %19 = vector.shape_cast %18 : vector<1x256x4xf32> to vector<256x4xf32>
    %20 = vector.shape_cast %17 : vector<256x4xf32> to vector<1x256x4xf32>
    tpu.vector_store %arg6[%c0_12, %c0_13, %c0_14], %20 {strides = array<i32>} : memref<1x256x4xf32, #tpu.memory_space<vmem>>, vector<1x256x4xf32>,
    return
  }
  func.func @transform_0(%arg0: i32) -> (i32, i32, i32, i32) {
    %c0_i32 = arith.constant 0 : i32
    %c0_i32_0 = arith.constant 0 : i32
    %c0_i32_1 = arith.constant 0 : i32
    %c0_i32_2 = arith.constant 0 : i32
    return %arg0, %c0_i32, %c0_i32_0, %c0_i32_1 : i32, i32, i32, i32
  }
  func.func @transform_1(%arg0: i32) -> (i32, i32) {
    %c0_i32 = arith.constant 0 : i32
    %c0_i32_0 = arith.constant 0 : i32
    %c0_i32_1 = arith.constant 0 : i32
    return %c0_i32, %c0_i32_0 : i32, i32
  }
  func.func @transform_2(%arg0: i32) -> (i32, i32) {
    %c0_i32 = arith.constant 0 : i32
    %c0_i32_0 = arith.constant 0 : i32
    %c0_i32_1 = arith.constant 0 : i32
    return %c0_i32, %c0_i32_0 : i32, i32
  }
  func.func @transform_3(%arg0: i32) -> (i32, i32) {
    %c0_i32 = arith.constant 0 : i32
    %c0_i32_0 = arith.constant 0 : i32
    %c0_i32_1 = arith.constant 0 : i32
    return %c0_i32, %c0_i32_0 : i32, i32
  }
  func.func @transform_4(%arg0: i32) -> (i32, i32) {
    %c0_i32 = arith.constant 0 : i32
    %c0_i32_0 = arith.constant 0 : i32
    %c0_i32_1 = arith.constant 0 : i32
    return %c0_i32, %c0_i32_0 : i32, i32
  }
  func.func @transform_5(%arg0: i32) -> (i32, i32, i32) {
    %c0_i32 = arith.constant 0 : i32
    %c0_i32_0 = arith.constant 0 : i32
    %c0_i32_1 = arith.constant 0 : i32
    return %arg0, %c0_i32, %c0_i32_0 : i32, i32, i32
  }
}

</mosaic_0001>

<bundles_post_ra>
// kernel: tpu_custom_call.1
= control target key start
LH: loop header
LB: loop body
LE: loop exit
PB: predicated region body
PF: predicated region fallthrough
CT: control target
= control target key end

     0   :  { %s968_s18 = smov 0   ;;  %s1238_s0 = inlined_call_operand.vmem [shape: f32[2,16,16,4], index: 0, kind: input, shape index: {}]   ;;  %s1239_s1 = inlined_call_operand.vmem [shape: f32[1,4], index: 1, kind: input, shape index: {}]   ;;  %s1240_s2 = inlined_call_operand.vmem [shape: f32[1,4], index: 2, kind: input, shape index: {}]   ;;  %s1241_s3 = inlined_call_operand.vmem [shape: f32[4,4], index: 3, kind: input, shape index: {}]   ;;  %s1242_s4 = inlined_call_operand.vmem [shape: f32[1,4], index: 4, kind: input, shape index: {}]   ;;  %s1243_s5 = inlined_call_operand.vmem [shape: f32[2,256,4], index: 5, kind: output, shape index: {}]  }
   0x1 LB: > { %s788_s19 = sadd.s32 4294967295, %s936_s18   ;;  %p792_p0 = scmp.ge.s32.totalorder %s936_s18, 1  ;;  %s936_s18 = sphi %s968_s18, %s15_s18  }
   0x2   : > { %p187_p1 = scmp.lt.s32.totalorder %s936_s18, 3 }
   0x4   : > { %p188_p2 = pnand %p792_p0, %p187_p1 }
   0x5   : > { %p215_p3 = scmp.lt.s32.totalorder (!%p188_p2), %s788_s19, 1 }
   0x6   : > { %191 = sbr.rel (%p188_p2) target bundleno = 249 (0xf9), region = 40 }
   0xb   : > { %v367_v0 = vld [vmem:[%s1241_s3] sm:$0xf]  ;;  %vm472_vm0 = vcmask 1043456   ;;  %s1245_s19 = smov (!%p215_p3, %s788_s19), 1  ;;  %vm375_vm1 = vcmask 31744  }
   0xc   : > { %870 = vmatprep.subr.msk.mxu0 %vm472_vm0, %v367_v0  ;;  %920 = vmatprep.subr.msk.mxu1 %vm472_vm0, %v367_v0  ;;  %s835_s22 = sshll.u32 %s1245_s19, 8  ;;  %v985_v1 = vld [vmem:[%s1239_s1] ss:$0 sm:$0xff] }
   0xd   : > { %871 = vmatpush3.msk.msra.mxu0 %vm472_vm0, %v367_v0  ;;  %921 = vmatpush3.msk.msra.mxu1 %vm472_vm0, %v367_v0  ;;  %s992_s27 = scalar_lea.vmem %s1238_s0, %s835_s22  ;;  %v997_v2 = vld [vmem:[%s1240_s2] ss:$0 sm:$0xff]  ;;  %s1137_s9 = scalar_lea.vmem %s1243_s5, %s835_s22 }
   0xe   : > { %v227_v3 = vld [vmem:[%s992_s27] sm:$0xff]  ;;  %v228_v5 = vld [vmem:[%s992_s27 + $0x8] sm:$0xff]  ;;  %v229_v10 = vld [vmem:[%s992_s27 + $0x10] sm:$0xff] }
   0xf   : > { %v243_v4 = vld [vmem:[%s992_s27 + $0x80] sm:$0xff]  ;;  %v265_v6 = vmul.f32 %v985_v1, %v227_v3  ;;  %v266_v8 = vmul.f32 %v985_v1, %v228_v5  ;;  %v244_v9 = vld [vmem:[%s992_s27 + $0x88] sm:$0xff]  ;;  %v245_v11 = vld [vmem:[%s992_s27 + $0x90] sm:$0xff]  ;;  %v267_v13 = vmul.f32 %v985_v1, %v229_v10 }
  0x10   : > { %v281_v7 = vmul.f32 %v985_v1, %v243_v4  ;;  %v282_v12 = vmul.f32 %v985_v1, %v244_v9  ;;  %v283_v14 = vmul.f32 %v985_v1, %v245_v11  ;;  %v230_v15 = vld [vmem:[%s992_s27 + $0x18] sm:$0xff]  ;;  %v231_v25 = vld [vmem:[%s992_s27 + $0x20] sm:$0xff]  ;;  %v232_v27 = vld [vmem:[%s992_s27 + $0x28] sm:$0xff] }
  0x11   : > { %v246_v16 = vld [vmem:[%s992_s27 + $0x98] sm:$0xff]  ;;  %v303_v17 = vadd.f32 %v997_v2, %v265_v6  ;;  %v304_v19 = vadd.f32 %v997_v2, %v266_v8  ;;  %v268_v20 = vmul.f32 %v985_v1, %v230_v15  ;;  %v305_v22 = vadd.f32 %v997_v2, %v267_v13  ;;  %v247_v26 = vld [vmem:[%s992_s27 + $0xa0] sm:$0xff]  ;;  %v248_v32 = vld [vmem:[%s992_s27 + $0xa8] sm:$0xff] }
  0x12   : > { %v319_v18 = vadd.f32 %v997_v2, %v281_v7  ;;  %v320_v21 = vadd.f32 %v997_v2, %v282_v12  ;;  %v321_v23 = vadd.f32 %v997_v2, %v283_v14  ;;  %v284_v24 = vmul.f32 %v985_v1, %v246_v16  ;;  %v233_v33 = vld [vmem:[%s992_s27 + $0x30] sm:$0xff]  ;;  %v234_v43 = vld [vmem:[%s992_s27 + $0x38] sm:$0xff]  ;;  %v235_v56 = vld [vmem:[%s992_s27 + $0x40] sm:$0xff] }
  0x13   : > { %v335_v28 = vmax.f32 %v303_v17, 0.0  ;;  %v336_v30 = vmax.f32 %v304_v19, 0.0  ;;  %v306_v31 = vadd.f32 %v997_v2, %v268_v20  ;;  %v249_v34 = vld [vmem:[%s992_s27 + $0xb0] sm:$0xff]  ;;  %v337_v36 = vmax.f32 %v305_v22, 0.0  ;;  %v250_v48 = vld [vmem:[%s992_s27 + $0xb8] sm:$0xff]  ;;  %v251_v57 = vld [vmem:[%s992_s27 + $0xc0] sm:$0xff] }
  0x14   : > { %v351_v29 = vmax.f32 %v319_v18, 0.0  ;;  %v352_v35 = vmax.f32 %v320_v21, 0.0  ;;  %v353_v37 = vmax.f32 %v321_v23, 0.0  ;;  %v322_v38 = vadd.f32 %v997_v2, %v284_v24  ;;  %v236_v61 = vld [vmem:[%s992_s27 + $0x48] sm:$0xff]  ;;  %v237_v63 = vld [vmem:[%s992_s27 + $0x50] sm:$0xff]  ;;  %v238_v14 = vld [vmem:[%s992_s27 + $0x58] sm:$0xff] }
  0x15   : > { %872 = vmatprep.mubr.msk.f32.mxu0 %vm375_vm1, %v335_v28  ;;  %v338_v39 = vmax.f32 %v306_v31, 0.0  ;;  %v269_v40 = vmul.f32 %v985_v1, %v231_v25  ;;  %v285_v41 = vmul.f32 %v985_v1, %v247_v26  ;;  %v270_v42 = vmul.f32 %v985_v1, %v232_v27  ;;  %v252_v62 = vld [vmem:[%s992_s27 + $0xc8] sm:$0xff]  ;;  %v253_v6 = vld [vmem:[%s992_s27 + $0xd0] sm:$0xff]  ;;  %v254_v19 = vld [vmem:[%s992_s27 + $0xd8] sm:$0xff] }
  0x16   : > { %896 = vmatprep.mubr.msk.f32.mxu1 %vm375_vm1, %v351_v29  ;;  %873 = vmatmul.mubr.msk.f32.vlgmr.msra.gmra.mxu0 %vm375_vm1, %v336_v30  ;;  %v354_v44 = vmax.f32 %v322_v38, 0.0  ;;  %v286_v45 = vmul.f32 %v985_v1, %v248_v32  ;;  %v271_v46 = vmul.f32 %v985_v1, %v233_v33  ;;  %v287_v47 = vmul.f32 %v985_v1, %v249_v34  ;;  %v239_v24 = vld [vmem:[%s992_s27 + $0x60] sm:$0xff]  ;;  %v240_v30 = vld [vmem:[%s992_s27 + $0x68] sm:$0xff]  ;;  %v241_v34 = vld [vmem:[%s992_s27 + $0x70] sm:$0xff] }
  0x17   : > { %897 = vmatmul.mubr.msk.f32.vlgmr.msra.gmra.mxu1 %vm375_vm1, %v352_v35  ;;  %875 = vmatprep.mubr.msk.f32.mxu0 %vm375_vm1, %v337_v36  ;;  %v307_v49 = vadd.f32 %v997_v2, %v269_v40  ;;  %v323_v50 = vadd.f32 %v997_v2, %v285_v41  ;;  %v308_v51 = vadd.f32 %v997_v2, %v270_v42  ;;  %v255_v25 = vld [vmem:[%s992_s27 + $0xe0] sm:$0xff]  ;;  %v256_v31 = vld [vmem:[%s992_s27 + $0xe8] sm:$0xff] }
  0x18   : > { %899 = vmatprep.mubr.msk.f32.mxu1 %vm375_vm1, %v353_v37  ;;  %v324_v52 = vadd.f32 %v997_v2, %v286_v45  ;;  %v309_v53 = vadd.f32 %v997_v2, %v271_v46  ;;  %v325_v54 = vadd.f32 %v997_v2, %v287_v47  ;;  %v272_v55 = vmul.f32 %v985_v1, %v234_v43 }
  0x19   : > { %v339_v58 = vmax.f32 %v307_v49, 0.0  ;;  %v355_v59 = vmax.f32 %v323_v50, 0.0  ;;  %v288_v60 = vmul.f32 %v985_v1, %v250_v48  ;;  %v340_v0 = vmax.f32 %v308_v51, 0.0  ;;  %v242_v48 = vld [vmem:[%s992_s27 + $0x78] sm:$0xff] }
  0x1a   : > { %876 = vmatmul.mubr.msk.f32.gmra.mxu0 %vm375_vm1, %v338_v39  ;;  %v356_v3 = vmax.f32 %v324_v52, 0.0  ;;  %v341_v4 = vmax.f32 %v309_v53, 0.0  ;;  %v310_v5 = vadd.f32 %v997_v2, %v272_v55  ;;  %v357_v7 = vmax.f32 %v325_v54, 0.0  ;;  %v257_v39 = vld [vmem:[%s992_s27 + $0xf0] sm:$0xff]  ;;  %v258_v49 = vld [vmem:[%s992_s27 + $0xf8] sm:$0xff] }
  0x1b   : > { %900 = vmatmul.mubr.msk.f32.gmra.mxu1 %vm375_vm1, %v354_v44  ;;  %878 = vmatprep.mubr.msk.f32.mxu0 %vm375_vm1, %v339_v58  ;;  %v326_v8 = vadd.f32 %v997_v2, %v288_v60  ;;  %v273_v9 = vmul.f32 %v985_v1, %v235_v56  ;;  %v289_v10 = vmul.f32 %v985_v1, %v251_v57 }
  0x1c   : > { %902 = vmatprep.mubr.msk.f32.mxu1 %vm375_vm1, %v355_v59  ;;  %v274_v11 = vmul.f32 %v985_v1, %v236_v61  ;;  %v290_v12 = vmul.f32 %v985_v1, %v252_v62  ;;  %v275_v13 = vmul.f32 %v985_v1, %v237_v63  ;;  %v342_v15 = vmax.f32 %v310_v5, 0.0 }
  0x1d   : > { %v311_v16 = vadd.f32 %v997_v2, %v273_v9  ;;  %v327_v17 = vadd.f32 %v997_v2, %v289_v10  ;;  %v291_v18 = vmul.f32 %v985_v1, %v253_v6  ;;  %v358_v20 = vmax.f32 %v326_v8, 0.0 }
  0x1e   : > { %879 = vmatmul.mubr.msk.f32.gmra.mxu0 %vm375_vm1, %v340_v0  ;;  %v312_v21 = vadd.f32 %v997_v2, %v274_v11  ;;  %v328_v22 = vadd.f32 %v997_v2, %v290_v12  ;;  %v313_v23 = vadd.f32 %v997_v2, %v275_v13  ;;  %v276_v29 = vmul.f32 %v985_v1, %v238_v14 }
  0x1f   : > { %903 = vmatmul.mubr.msk.f32.gmra.mxu1 %vm375_vm1, %v356_v3  ;;  %881 = vmatprep.mubr.msk.f32.mxu0 %vm375_vm1, %v341_v4  ;;  %v343_v26 = vmax.f32 %v311_v16, 0.0  ;;  %v359_v27 = vmax.f32 %v327_v17, 0.0  ;;  %v329_v28 = vadd.f32 %v997_v2, %v291_v18  ;;  %v292_v33 = vmul.f32 %v985_v1, %v254_v19 }
  0x20   : > { %905 = vmatprep.mubr.msk.f32.mxu1 %vm375_vm1, %v357_v7  ;;  %v344_v32 = vmax.f32 %v312_v21, 0.0  ;;  %v360_v35 = vmax.f32 %v328_v22, 0.0  ;;  %v314_v36 = vadd.f32 %v997_v2, %v276_v29  ;;  %v277_v37 = vmul.f32 %v985_v1, %v239_v24 }
  0x21   : > { %v293_v38 = vmul.f32 %v985_v1, %v255_v25  ;;  %v345_v40 = vmax.f32 %v313_v23, 0.0  ;;  %v330_v41 = vadd.f32 %v997_v2, %v292_v33  ;;  %v278_v42 = vmul.f32 %v985_v1, %v240_v30 }
  0x22   : > { %882 = vmatmul.mubr.msk.f32.gmra.mxu0 %vm375_vm1, %v342_v15  ;;  %v294_v43 = vmul.f32 %v985_v1, %v256_v31  ;;  %v361_v44 = vmax.f32 %v329_v28, 0.0  ;;  %v315_v45 = vadd.f32 %v997_v2, %v277_v37  ;;  %v279_v47 = vmul.f32 %v985_v1, %v241_v34 }
  0x23   : > { %906 = vmatmul.mubr.msk.f32.gmra.mxu1 %vm375_vm1, %v358_v20  ;;  %884 = vmatprep.mubr.msk.f32.mxu0 %vm375_vm1, %v343_v26  ;;  %v331_v46 = vadd.f32 %v997_v2, %v293_v38  ;;  %v295_v50 = vmul.f32 %v985_v1, %v257_v39  ;;  %v346_v51 = vmax.f32 %v314_v36, 0.0  ;;  %v316_v52 = vadd.f32 %v997_v2, %v278_v42 }
  0x24   : > { %908 = vmatprep.mubr.msk.f32.mxu1 %vm375_vm1, %v359_v27  ;;  %v362_v53 = vmax.f32 %v330_v41, 0.0  ;;  %v332_v54 = vadd.f32 %v997_v2, %v294_v43  ;;  %v280_v55 = vmul.f32 %v985_v1, %v242_v48  ;;  %v296_v56 = vmul.f32 %v985_v1, %v258_v49 }
  0x25   : > { %v347_v57 = vmax.f32 %v315_v45, 0.0  ;;  %v363_v58 = vmax.f32 %v331_v46, 0.0  ;;  %v317_v59 = vadd.f32 %v997_v2, %v279_v47  ;;  %v333_v60 = vadd.f32 %v997_v2, %v295_v50 }
  0x26   : > { %885 = vmatmul.mubr.msk.f32.gmra.mxu0 %vm375_vm1, %v344_v32  ;;  %v348_v61 = vmax.f32 %v316_v52, 0.0  ;;  %v364_v62 = vmax.f32 %v332_v54, 0.0  ;;  %v318_v63 = vadd.f32 %v997_v2, %v280_v55  ;;  %v334_v1 = vadd.f32 %v997_v2, %v296_v56  ;;  %v1130_v2 = vld [vmem:[%s1242_s4] ss:$0 sm:$0xff] }
  0x27   : > { %909 = vmatmul.mubr.msk.f32.gmra.mxu1 %vm375_vm1, %v360_v35  ;;  %887 = vmatprep.mubr.msk.f32.mxu0 %vm375_vm1, %v345_v40  ;;  %v349_v0 = vmax.f32 %v317_v59, 0.0  ;;  %v365_v3 = vmax.f32 %v333_v60, 0.0 }
  0x28   : > { %911 = vmatprep.mubr.msk.f32.mxu1 %vm375_vm1, %v361_v44  ;;  %v350_v4 = vmax.f32 %v318_v63, 0.0  ;;  %v366_v5 = vmax.f32 %v334_v1, 0.0 }
  0x2a   : > { %888 = vmatmul.mubr.msk.f32.gmra.mxu0 %vm375_vm1, %v346_v51 }
  0x2b   : > { %912 = vmatmul.mubr.msk.f32.gmra.mxu1 %vm375_vm1, %v362_v53  ;;  %890 = vmatprep.mubr.msk.f32.mxu0 %vm375_vm1, %v347_v57 }
  0x2c   : > { %914 = vmatprep.mubr.msk.f32.mxu1 %vm375_vm1, %v363_v58 }
  0x2e   : > { %891 = vmatmul.mubr.msk.f32.gmra.mxu0 %vm375_vm1, %v348_v61 }
  0x2f   : > { %915 = vmatmul.mubr.msk.f32.gmra.mxu1 %vm375_vm1, %v364_v62  ;;  %893 = vmatprep.mubr.msk.f32.mxu0 %vm375_vm1, %v349_v0 }
  0x30   : > { %917 = vmatprep.mubr.msk.f32.mxu1 %vm375_vm1, %v365_v3 }
  0x32   : > { %894 = vmatmul.mubr.msk.f32.gmra.mxu0 %vm375_vm1, %v350_v4 }
  0x33   : > { %918 = vmatmul.mubr.msk.f32.gmra.mxu1 %vm375_vm1, %v366_v5 }
  0xd6   : > { %v874_v6 = vpop.f32.mrf.mxu0 }
  0xd7   : > { %v898_v7 = vpop.f32.mrf.mxu1  ;;  %v548_v8 = vadd.f32 %v874_v6, %v1130_v2 }
  0xd8   : > { %v628_v9 = vadd.f32 %v898_v7, %v1130_v2  ;;  %v542_v10 = vpop.f32.mrf.mxu0 }
  0xd9   : > { %v622_v11 = vpop.f32.mrf.mxu1  ;;  %702 = vst.msk [vmem:[%s1137_s9 + $0x8] sm:$0xff] %vm375_vm1, %v548_v8  ;;  %v543_v12 = vadd.f32 %v1130_v2, %v542_v10 }
  0xda   : > { %718 = vst.msk [vmem:[%s1137_s9 + $0x88] sm:$0xff] %vm375_vm1, %v628_v9  ;;  %v623_v13 = vadd.f32 %v1130_v2, %v622_v11  ;;  %v877_v14 = vpop.f32.mrf.mxu0 }
  0xdb   : > { %v901_v15 = vpop.f32.mrf.mxu1  ;;  %701 = vst.msk [vmem:[%s1137_s9] sm:$0xff] %vm375_vm1, %v543_v12  ;;  %v558_v16 = vadd.f32 %v877_v14, %v1130_v2 }
  0xdc   : > { %717 = vst.msk [vmem:[%s1137_s9 + $0x80] sm:$0xff] %vm375_vm1, %v623_v13  ;;  %v638_v17 = vadd.f32 %v901_v15, %v1130_v2  ;;  %v552_v18 = vpop.f32.mrf.mxu0 }
  0xdd   : > { %v632_v19 = vpop.f32.mrf.mxu1  ;;  %704 = vst.msk [vmem:[%s1137_s9 + $0x18] sm:$0xff] %vm375_vm1, %v558_v16  ;;  %v553_v20 = vadd.f32 %v1130_v2, %v552_v18 }
  0xde   : > { %720 = vst.msk [vmem:[%s1137_s9 + $0x98] sm:$0xff] %vm375_vm1, %v638_v17  ;;  %v633_v21 = vadd.f32 %v1130_v2, %v632_v19  ;;  %v880_v22 = vpop.f32.mrf.mxu0 }
  0xdf   : > { %v904_v23 = vpop.f32.mrf.mxu1  ;;  %703 = vst.msk [vmem:[%s1137_s9 + $0x10] sm:$0xff] %vm375_vm1, %v553_v20  ;;  %v568_v24 = vadd.f32 %v880_v22, %v1130_v2 }
  0xe0   : > { %719 = vst.msk [vmem:[%s1137_s9 + $0x90] sm:$0xff] %vm375_vm1, %v633_v21  ;;  %v648_v25 = vadd.f32 %v904_v23, %v1130_v2  ;;  %v562_v26 = vpop.f32.mrf.mxu0 }
  0xe1   : > { %v642_v27 = vpop.f32.mrf.mxu1  ;;  %706 = vst.msk [vmem:[%s1137_s9 + $0x28] sm:$0xff] %vm375_vm1, %v568_v24  ;;  %v563_v28 = vadd.f32 %v1130_v2, %v562_v26 }
  0xe2   : > { %722 = vst.msk [vmem:[%s1137_s9 + $0xa8] sm:$0xff] %vm375_vm1, %v648_v25  ;;  %v643_v29 = vadd.f32 %v1130_v2, %v642_v27  ;;  %v883_v30 = vpop.f32.mrf.mxu0 }
  0xe3   : > { %v907_v31 = vpop.f32.mrf.mxu1  ;;  %705 = vst.msk [vmem:[%s1137_s9 + $0x20] sm:$0xff] %vm375_vm1, %v563_v28  ;;  %v578_v32 = vadd.f32 %v883_v30, %v1130_v2 }
  0xe4   : > { %721 = vst.msk [vmem:[%s1137_s9 + $0xa0] sm:$0xff] %vm375_vm1, %v643_v29  ;;  %v658_v33 = vadd.f32 %v907_v31, %v1130_v2  ;;  %v572_v34 = vpop.f32.mrf.mxu0 }
  0xe5   : > { %v652_v35 = vpop.f32.mrf.mxu1  ;;  %708 = vst.msk [vmem:[%s1137_s9 + $0x38] sm:$0xff] %vm375_vm1, %v578_v32  ;;  %v573_v36 = vadd.f32 %v1130_v2, %v572_v34 }
  0xe6   : > { %724 = vst.msk [vmem:[%s1137_s9 + $0xb8] sm:$0xff] %vm375_vm1, %v658_v33  ;;  %v653_v37 = vadd.f32 %v1130_v2, %v652_v35  ;;  %v886_v38 = vpop.f32.mrf.mxu0 }
  0xe7   : > { %v910_v39 = vpop.f32.mrf.mxu1  ;;  %707 = vst.msk [vmem:[%s1137_s9 + $0x30] sm:$0xff] %vm375_vm1, %v573_v36  ;;  %v588_v40 = vadd.f32 %v886_v38, %v1130_v2 }
  0xe8   : > { %723 = vst.msk [vmem:[%s1137_s9 + $0xb0] sm:$0xff] %vm375_vm1, %v653_v37  ;;  %v668_v41 = vadd.f32 %v910_v39, %v1130_v2  ;;  %v582_v42 = vpop.f32.mrf.mxu0 }
  0xe9   : > { %v662_v43 = vpop.f32.mrf.mxu1  ;;  %710 = vst.msk [vmem:[%s1137_s9 + $0x48] sm:$0xff] %vm375_vm1, %v588_v40  ;;  %v583_v44 = vadd.f32 %v1130_v2, %v582_v42 }
  0xea   : > { %726 = vst.msk [vmem:[%s1137_s9 + $0xc8] sm:$0xff] %vm375_vm1, %v668_v41  ;;  %v663_v45 = vadd.f32 %v1130_v2, %v662_v43  ;;  %v889_v46 = vpop.f32.mrf.mxu0 }
  0xeb   : > { %v913_v47 = vpop.f32.mrf.mxu1  ;;  %709 = vst.msk [vmem:[%s1137_s9 + $0x40] sm:$0xff] %vm375_vm1, %v583_v44  ;;  %v598_v48 = vadd.f32 %v889_v46, %v1130_v2 }
  0xec   : > { %725 = vst.msk [vmem:[%s1137_s9 + $0xc0] sm:$0xff] %vm375_vm1, %v663_v45  ;;  %v678_v49 = vadd.f32 %v913_v47, %v1130_v2  ;;  %v592_v50 = vpop.f32.mrf.mxu0 }
  0xed   : > { %v672_v51 = vpop.f32.mrf.mxu1  ;;  %712 = vst.msk [vmem:[%s1137_s9 + $0x58] sm:$0xff] %vm375_vm1, %v598_v48  ;;  %v593_v52 = vadd.f32 %v1130_v2, %v592_v50 }
  0xee   : > { %728 = vst.msk [vmem:[%s1137_s9 + $0xd8] sm:$0xff] %vm375_vm1, %v678_v49  ;;  %v673_v53 = vadd.f32 %v1130_v2, %v672_v51  ;;  %v892_v54 = vpop.f32.mrf.mxu0 }
  0xef   : > { %v916_v55 = vpop.f32.mrf.mxu1  ;;  %711 = vst.msk [vmem:[%s1137_s9 + $0x50] sm:$0xff] %vm375_vm1, %v593_v52  ;;  %v608_v56 = vadd.f32 %v892_v54, %v1130_v2 }
  0xf0   : > { %727 = vst.msk [vmem:[%s1137_s9 + $0xd0] sm:$0xff] %vm375_vm1, %v673_v53  ;;  %v688_v57 = vadd.f32 %v916_v55, %v1130_v2  ;;  %v602_v58 = vpop.f32.mrf.mxu0 }
  0xf1   : > { %v682_v59 = vpop.f32.mrf.mxu1  ;;  %714 = vst.msk [vmem:[%s1137_s9 + $0x68] sm:$0xff] %vm375_vm1, %v608_v56  ;;  %v603_v60 = vadd.f32 %v1130_v2, %v602_v58 }
  0xf2   : > { %730 = vst.msk [vmem:[%s1137_s9 + $0xe8] sm:$0xff] %vm375_vm1, %v688_v57  ;;  %v683_v61 = vadd.f32 %v1130_v2, %v682_v59  ;;  %v895_v62 = vpop.f32.mrf.mxu0 }
  0xf3   : > { %v919_v63 = vpop.f32.mrf.mxu1  ;;  %713 = vst.msk [vmem:[%s1137_s9 + $0x60] sm:$0xff] %vm375_vm1, %v603_v60  ;;  %v618_v1 = vadd.f32 %v895_v62, %v1130_v2 }
  0xf4   : > { %729 = vst.msk [vmem:[%s1137_s9 + $0xe0] sm:$0xff] %vm375_vm1, %v683_v61  ;;  %v698_v0 = vadd.f32 %v919_v63, %v1130_v2  ;;  %v612_v3 = vpop.f32.mrf.mxu0 }
  0xf5   : > { %v692_v4 = vpop.f32.mrf.mxu1  ;;  %716 = vst.msk [vmem:[%s1137_s9 + $0x78] sm:$0xff] %vm375_vm1, %v618_v1  ;;  %v613_v5 = vadd.f32 %v1130_v2, %v612_v3 }
  0xf6   : > { %732 = vst.msk [vmem:[%s1137_s9 + $0xf8] sm:$0xff] %vm375_vm1, %v698_v0  ;;  %v693_v6 = vadd.f32 %v1130_v2, %v692_v4 }
  0xf7   : > { %715 = vst.msk [vmem:[%s1137_s9 + $0x70] sm:$0xff] %vm375_vm1, %v613_v5 }
  0xf8   : > { %731 = vst.msk [vmem:[%s1137_s9 + $0xf0] sm:$0xff] %vm375_vm1, %v693_v6 }
  0xf9 PF: > { %s15_s18 = sadd.s32 1, %s936_s18  }
  0xfa   : > { %p12_p4 = scmp.ge.s32.totalorder %s15_s18, 4  }
  0xfc   :  { %14 = sbr.rel (!%p12_p4) target bundleno = 1 (0x1), region = 70 }

</bundles_post_ra>
